<compile_context>
chip_gen: v5e
topology: v5e:2x2
jax: 0.10.0
libtpu: 0.0.40
codegen_flags: <defaults>
</compile_context>

<pallas_src>
import jax
import jax.numpy as jnp
from jax.experimental import pallas as pl
from jax.experimental.pallas import tpu as pltpu


_MIN_PIPELINE_STEPS = 4  # >=2 per TensorCore on v7x; enough for DMA overlap.


def _sublane_quantum(dtype):
    """Rows per packed sublane group: f32 -> 8, bf16 -> 16, int8/fp8 -> 32."""
    return max(8, 32 // jnp.dtype(dtype).itemsize)


def _target_block_bytes():
    """Generation-aware output-block budget.

    The double-buffered footprint of these kernels is ~4x the output block
    (inputs + output, two buffers each), so 2 MiB blocks stay under v5e's
    16 MiB default scoped VMEM and 4 MiB blocks under the 32 MiB defaults on
    v6e / v7x (v7x physical VMEM is only 64 MiB -- do not go bigger without
    carefully raising vmem_limit_bytes).
    """
    try:
        kind = jax.devices()[0].device_kind.lower()
    except Exception:  # no device info at trace time -> conservative default
        kind = ""
    if "v5 lite" in kind or "v5e" in kind or "v5litepod" in kind:
        return 2 << 20
    return 4 << 20


def _pick_class_tile(n_cls, bytes_per_class, dtype):
    """Class-tile size for the grid.

    Big blocks amortize the ~0.35 us/step pipeline overhead; once the problem
    exceeds a single block we keep >= _MIN_PIPELINE_STEPS grid steps so input
    DMA / copy / writeback overlap and the ("parallel",) class axis can be
    split across both v7x TensorCores.  The tile is a multiple of the dtype's
    packed-sublane quantum or equal to n_cls (TPU second-to-last-dim rule).
    """
    q = _sublane_quantum(dtype)
    target = _target_block_bytes()
    total = n_cls * bytes_per_class
    if total <= target:
        return n_cls  # tiny problem: one block, per-step overhead irrelevant
    tc = max(1, target // max(1, bytes_per_class))
    tc = min(tc, max(1, n_cls // _MIN_PIPELINE_STEPS))
    if tc >= n_cls:
        return n_cls
    tc = max(q, (tc // q) * q)
    return min(tc, n_cls)


def assemble_prompts(ctx, token_prefix, token_suffix):
    """Full assembly: prompts = cat([prefix, ctx.expand, suffix], dim=1)."""
    n_cls, one, d = token_prefix.shape
    assert one == 1
    n_ctx = ctx.shape[0]
    suf_len = token_suffix.shape[1]
    L = 1 + n_ctx + suf_len
    assert token_prefix.dtype == ctx.dtype == token_suffix.dtype, (
        "prefix/ctx/suffix dtypes must match (avoid silent casts)")
    dtype = ctx.dtype
    itemsize = jnp.dtype(dtype).itemsize
    assert d % 128 == 0, "ctx_dim must be a multiple of 128 for lane-dense stores"

    # Lane-dense flattened views: all segment boundaries (0, d, (1+n_ctx)*d)
    # are multiples of 128 -> unmasked full-lane stores.
    prefix_flat = token_prefix.reshape(n_cls, d)
    suffix_flat = token_suffix.reshape(n_cls, suf_len * d)
    ctx_flat = ctx.reshape(1, n_ctx * d)

    tc = _pick_class_tile(n_cls, L * d * itemsize, dtype)
    grid = (pl.cdiv(n_cls, tc),)

    def kernel(prefix_ref, ctx_ref, suffix_ref, out_ref):
        # Three direct segment stores; no concatenate intermediate.
        out_ref[:, :d] = prefix_ref[...]
        out_ref[:, d:(1 + n_ctx) * d] = jnp.broadcast_to(
            ctx_ref[...], (tc, n_ctx * d))
        out_ref[:, (1 + n_ctx) * d:] = suffix_ref[...]

    grid_spec = pltpu.PrefetchScalarGridSpec(
        num_scalar_prefetch=0,
        grid=grid,
        in_specs=[
            pl.BlockSpec((tc, d), lambda c: (c, 0)),            # prefix tile
            pl.BlockSpec((1, n_ctx * d), lambda c: (0, 0)),     # shared ctx
            pl.BlockSpec((tc, suf_len * d), lambda c: (c, 0)),  # suffix tile
        ],
        out_specs=pl.BlockSpec((tc, L * d), lambda c: (c, 0)),
    )

    bytes_accessed = (n_cls * L * d          # output write
                      + n_cls * d            # prefix read
                      + n_ctx * d            # ctx read
                      + n_cls * suf_len * d  # suffix read
                      ) * itemsize

    out_flat = pl.pallas_call(
        kernel,
        out_shape=jax.ShapeDtypeStruct((n_cls, L * d), dtype),
        grid_spec=grid_spec,
        compiler_params=pltpu.CompilerParams(
            dimension_semantics=("parallel",),
        ),
        cost_estimate=pl.CostEstimate(
            flops=0, transcendentals=0, bytes_accessed=bytes_accessed),
    )(prefix_flat, ctx_flat, suffix_flat)
    return out_flat.reshape(n_cls, L, d)


def update_ctx_in_prompts(prompts, ctx):
    """Steady-state forward: prefix/suffix are frozen buffers, so only the
    [SOS | ctx] head band of an existing prompts array is rewritten; suffix
    rows are retained in place via input_output_aliases.  Per class only the
    d-wide frozen prefix column is read and the (1+n_ctx)*d head band written
    (~(2+n_ctx)*d bytes of HBM traffic per class instead of 2*L*d).

    For the alias to avoid a defensive full-prompts copy, call under
    jax.jit(..., donate_argnums=0) (the caller must donate `prompts`).
    """
    n_cls, L, d = prompts.shape
    n_ctx = ctx.shape[0]
    assert prompts.dtype == ctx.dtype
    assert d % 128 == 0, "ctx_dim must be a multiple of 128 for lane-dense stores"
    dtype = ctx.dtype
    itemsize = jnp.dtype(dtype).itemsize
    head = (1 + n_ctx) * d  # lane-dense width of the [prefix row | ctx band]

    prompts_flat = prompts.reshape(n_cls, L * d)
    ctx_flat = ctx.reshape(1, n_ctx * d)

    tc = _pick_class_tile(n_cls, head * itemsize, dtype)
    grid = (pl.cdiv(n_cls, tc),)

    def kernel(prefix_ref, ctx_ref, out_ref):
        # Only the d-wide frozen prefix column is DMA'd in; the suffix columns
        # of the aliased output buffer are never touched.
        out_ref[:, :d] = prefix_ref[...]
        out_ref[:, d:] = jnp.broadcast_to(ctx_ref[...], (tc, n_ctx * d))

    grid_spec = pltpu.PrefetchScalarGridSpec(
        num_scalar_prefetch=0,
        grid=grid,
        in_specs=[
            pl.BlockSpec((tc, d), lambda c: (c, 0)),         # frozen prefix col
            pl.BlockSpec((1, n_ctx * d), lambda c: (0, 0)),  # shared ctx
        ],
        out_specs=pl.BlockSpec((tc, head), lambda c: (c, 0)),
    )

    bytes_accessed = (n_cls * d        # prefix-column read
                      + n_cls * head   # head-band write
                      + n_ctx * d      # ctx read
                      ) * itemsize

    out_flat = pl.pallas_call(
        kernel,
        out_shape=jax.ShapeDtypeStruct((n_cls, L * d), dtype),
        grid_spec=grid_spec,
        input_output_aliases={0: 0},  # suffix rows retained in place
        compiler_params=pltpu.CompilerParams(
            dimension_semantics=("parallel",),
        ),
        cost_estimate=pl.CostEstimate(
            flops=0, transcendentals=0, bytes_accessed=bytes_accessed),
    )(prompts_flat, ctx_flat)
    return out_flat.reshape(n_cls, L, d)


def vl_prompt_learner_forward(ctx, token_prefix, token_suffix):
    """Forward pass of VLPromptLearner (use_prompt_stage=True)."""
    return assemble_prompts(ctx, token_prefix, token_suffix)


if __name__ == "__main__":
    # Small deterministic setup consistent with the module.
    n_cls = 16
    n_ctx = 4
    ctx_dim = 128          # lane-friendly embedding width (CLIP text dim is 512)
    context_length = 16    # small stand-in for CLIP's 77
    suf_len = context_length - 1 - n_ctx

    key = jax.random.PRNGKey(0)
    k_ctx, k_pre, k_suf, k_ctx2 = jax.random.split(key, 4)

    # nn.init.normal_(ctx_vectors, std=0.02)
    ctx = 0.02 * jax.random.normal(k_ctx, (n_ctx, ctx_dim), dtype=jnp.float32)
    # TODO(synk): the real module derives token_prefix/token_suffix from
    # clip_model.token_embedding of tokenized class prompts; here they are
    # deterministic synthetic frozen embeddings.
    token_prefix = jax.random.normal(k_pre, (n_cls, 1, ctx_dim), dtype=jnp.float32)
    token_suffix = jax.random.normal(k_suf, (n_cls, suf_len, ctx_dim), dtype=jnp.float32)

    # --- full assembly (first forward / construct_prompts) ---
    prompts = vl_prompt_learner_forward(ctx, token_prefix, token_suffix)
    prompts = jax.block_until_ready(prompts)

    ctx_exp = jnp.broadcast_to(ctx[None], (n_cls, n_ctx, ctx_dim))
    ref = jnp.concatenate([token_prefix, ctx_exp, token_suffix], axis=1)
    assert prompts.shape == (n_cls, context_length, ctx_dim)
    assert prompts.dtype == jnp.float32
    assert jnp.allclose(prompts, ref), "assemble_prompts mismatch vs reference"

    # --- steady-state forward: new learned ctx, frozen prefix/suffix ---
    # Donate the prompts buffer so input_output_aliases is honored in place.
    update_fn = jax.jit(update_ctx_in_prompts, donate_argnums=(0,))
    ctx2 = 0.02 * jax.random.normal(k_ctx2, (n_ctx, ctx_dim), dtype=jnp.float32)
    prompts2 = update_fn(prompts, ctx2)
    prompts2 = jax.block_until_ready(prompts2)

    ctx2_exp = jnp.broadcast_to(ctx2[None], (n_cls, n_ctx, ctx_dim))
    ref2 = jnp.concatenate([token_prefix, ctx2_exp, token_suffix], axis=1)
    assert prompts2.shape == (n_cls, context_length, ctx_dim)
    assert jnp.allclose(prompts2, ref2), "update_ctx_in_prompts mismatch vs reference"

    print("KERNEL_OK")
</pallas_src>

<mosaic_0001>
module attributes {stable_mosaic.version = 11 : i64} {
  func.func @kernel(%arg0: i32, %arg1: memref<16x128xf32, #tpu.memory_space<vmem>>, %arg2: memref<1x512xf32, #tpu.memory_space<vmem>>, %arg3: memref<16x1408xf32, #tpu.memory_space<vmem>>, %arg4: memref<16x2048xf32, #tpu.memory_space<vmem>>) attributes {dimension_semantics = [#tpu.dimension_semantics<parallel>], iteration_bounds = array<i64: 1>, scalar_prefetch = 0 : i64, scratch_operands = 0 : i64, tpu.core_type = #tpu.core_type<tc>, window_params = [{transform_indices = @transform_0, window_bounds = array<i64: 16, 128>}, {pipeline_mode = #tpu.pipeline_mode<synchronous>, transform_indices = @transform_1, window_bounds = array<i64: 1, 512>}, {transform_indices = @transform_2, window_bounds = array<i64: 16, 1408>}, {transform_indices = @transform_3, window_bounds = array<i64: 16, 2048>}]} {
    %c0 = arith.constant 0 : index
    %c0_0 = arith.constant 0 : index
    %0 = vector.load %arg1[%c0, %c0_0] : memref<16x128xf32, #tpu.memory_space<vmem>>, vector<16x128xf32>
    %c0_1 = arith.constant 0 : index
    %c0_2 = arith.constant 0 : index
    %1 = vector.load %arg4[%c0_1, %c0_2] : memref<16x2048xf32, #tpu.memory_space<vmem>>, vector<16x128xf32>
    tpu.vector_store %arg4[%c0_1, %c0_2], %0 {strides = array<i32>} : memref<16x2048xf32, #tpu.memory_space<vmem>>, vector<16x128xf32>,
    %c0_3 = arith.constant 0 : index
    %c0_4 = arith.constant 0 : index
    %2 = vector.load %arg2[%c0_3, %c0_4] : memref<1x512xf32, #tpu.memory_space<vmem>>, vector<1x512xf32>
    %3 = vector.shape_cast %2 : vector<1x512xf32> to vector<1x512xf32>
    %4 = vector.broadcast %3 : vector<1x512xf32> to vector<16x512xf32>
    %c0_5 = arith.constant 0 : index
    %c128 = arith.constant 128 : index
    %5 = vector.load %arg4[%c0_5, %c128] : memref<16x2048xf32, #tpu.memory_space<vmem>>, vector<16x512xf32>
    tpu.vector_store %arg4[%c0_5, %c128], %4 {strides = array<i32>} : memref<16x2048xf32, #tpu.memory_space<vmem>>, vector<16x512xf32>,
    %c0_6 = arith.constant 0 : index
    %c0_7 = arith.constant 0 : index
    %6 = vector.load %arg3[%c0_6, %c0_7] : memref<16x1408xf32, #tpu.memory_space<vmem>>, vector<16x1408xf32>
    %c0_8 = arith.constant 0 : index
    %c640 = arith.constant 640 : index
    %7 = vector.load %arg4[%c0_8, %c640] : memref<16x2048xf32, #tpu.memory_space<vmem>>, vector<16x1408xf32>
    tpu.vector_store %arg4[%c0_8, %c640], %6 {strides = array<i32>} : memref<16x2048xf32, #tpu.memory_space<vmem>>, vector<16x1408xf32>,
    return
  }
  func.func @transform_0(%arg0: i32) -> (i32, i32) {
    %c0_i32 = arith.constant 0 : i32
    %c0_i32_0 = arith.constant 0 : i32
    return %arg0, %c0_i32 : i32, i32
  }
  func.func @transform_1(%arg0: i32) -> (i32, i32) {
    %c0_i32 = arith.constant 0 : i32
    %c0_i32_0 = arith.constant 0 : i32
    %c0_i32_1 = arith.constant 0 : i32
    return %c0_i32, %c0_i32_0 : i32, i32
  }
  func.func @transform_2(%arg0: i32) -> (i32, i32) {
    %c0_i32 = arith.constant 0 : i32
    %c0_i32_0 = arith.constant 0 : i32
    return %arg0, %c0_i32 : i32, i32
  }
  func.func @transform_3(%arg0: i32) -> (i32, i32) {
    %c0_i32 = arith.constant 0 : i32
    %c0_i32_0 = arith.constant 0 : i32
    return %arg0, %c0_i32 : i32, i32
  }
}

</mosaic_0001>

<bundles_post_ra>
// kernel: tpu_custom_call.1
= control target key start
LH: loop header
LB: loop body
LE: loop exit
PB: predicated region body
PF: predicated region fallthrough
CT: control target
= control target key end

     0   :  { %8 = vsyncpa [#allocation3], 0  ;;  %s301_s0 = inlined_call_operand.hbm [shape: f32[16,128], index: 0, kind: input, shape index: {}]   ;;  %s302_s1 = inlined_call_operand.hbm [shape: f32[1,512], index: 1, kind: input, shape index: {}]   ;;  %s303_s2 = inlined_call_operand.hbm [shape: f32[16,1408], index: 2, kind: input, shape index: {}]   ;;  %s304_s3 = inlined_call_operand.hbm [shape: f32[16,2048], index: 3, kind: output, shape index: {}]  }
   0x1   :  { %9 = vsyncpa [#allocation6], 0  ;;  %s29_s14 = sshll.u32 %s302_s1, 4  ;;  %s30_s14 = int_to_ptr.hbm [resolvable:$true] %s29_s14 }
   0x2   :  { %10 = vsyncpa [#allocation4], 0  ;;  %s257_s15 = smov [#allocation5]   ;;  %s15_s19 = sshll.u32 %s301_s0, 4  ;;  %s16_s19 = int_to_ptr.hbm [resolvable:$true] %s15_s19 }
   0x3   :  { %s31_s16 = sshll.u32 %s257_s15, 4  ;;  %s258_s20 = smov [#allocation2]   ;;  %s32_s16 = int_to_ptr.vmem [resolvable:$true] %s31_s16 }
   0x4   :  { %34 = dma.hbm_to_vmem [thread:$0]  %s30_s14, 64, %s32_s16, [#allocation6]  }
   0x5   :  { %s17_s21 = sshll.u32 %s258_s20, 4  ;;  %s259_s22 = smov 128   ;;  %s18_s21 = int_to_ptr.vmem [resolvable:$true] %s17_s21 }
   0x6   :  { %s260_s23 = smov 8   ;;  %s39_s25 = sshll.u32 %s303_s2, 4  ;;  %s40_s25 = int_to_ptr.hbm [resolvable:$true] %s39_s25 }
   0x7   :  { %23 = dma.hbm_to_vmem [thread:$0]  %s16_s19, 256, %s18_s21, [#allocation3], %s259_s22, %s259_s22, %s260_s23  }
   0x8   :  { %s261_s26 = smov [#allocation7]   ;;  %s262_s28 = smov 1408  }
   0x9   :  { %s41_s27 = sshll.u32 %s261_s26, 4  ;;  %s263_s0 = smov 88   ;;  %s42_s27 = int_to_ptr.vmem [resolvable:$true] %s41_s27 }
   0xa   :  { %47 = dma.hbm_to_vmem [thread:$0]  %s40_s25, 2816, %s42_s27, [#allocation6], %s262_s28, %s262_s28, %s263_s0  }
   0xb   :  { %251 = dma.done.wait [#allocation3], 256  }
   0xc   :  { %252 = vsyncadd [#allocation3], 4294967040 }
   0xd   :  { %253 = dma.done.wait [#allocation6], 2880  }
   0xe   :  { %254 = vsyncadd [#allocation6], 4294964416  ;;  %v60_v0 = vld [vmem:[#allocation2] sm:$0xff]  ;;  %v61_v1 = vld [vmem:[#allocation2 + $0x8] sm:$0xff]  ;;  %s132_s30 = sshll.u32 %s304_s3, 4  ;;  %s264_s4 = smov [#allocation8]   ;;  %s133_s30 = int_to_ptr.hbm [resolvable:$true] %s132_s30 }
   0xf   :  { %v64_v2 = vld [vmem:[#allocation5] sm:$0xf]  ;;  %62 = vst [vmem:[#allocation8] sm:$0xff] %v60_v0  ;;  %v82_v7 = vld [vmem:[#allocation7] sm:$0xff]  ;;  %v83_v8 = vld [vmem:[#allocation7 + $0x8] sm:$0xff]  ;;  %s130_s5 = sshll.u32 %s264_s4, 4  ;;  %s131_s5 = int_to_ptr.vmem [resolvable:$true] %s130_s5 }
  0x10   :  { %v66_v3 = vperm.slane %v64_v2, 0  ;;  %v67_v4 = vperm.slane %v64_v2, 1  ;;  %63 = vst [vmem:[#allocation8 + $0x80] sm:$0xff] %v61_v1  ;;  %v68_v5 = vperm.slane %v64_v2, 2  ;;  %v69_v6 = vperm.slane %v64_v2, 3  ;;  %v84_v9 = vld [vmem:[#allocation7 + $0x10] sm:$0xff] }
  0x11   :  { %104 = vst [vmem:[#allocation8 + $0x28] sm:$0xff] %v82_v7  ;;  %v85_v10 = vld [vmem:[#allocation7 + $0x18] sm:$0xff]  ;;  %v86_v11 = vld [vmem:[#allocation7 + $0x20] sm:$0xff]  ;;  %v87_v12 = vld [vmem:[#allocation7 + $0x28] sm:$0xff]  ;;  %s265_s6 = smov 2048  }
  0x12   :  { %74 = vst [vmem:[#allocation8 + $0x8] sm:$0xff] %v66_v3  ;;  %v88_v13 = vld [vmem:[#allocation7 + $0x30] sm:$0xff]  ;;  %v89_v14 = vld [vmem:[#allocation7 + $0x38] sm:$0xff]  ;;  %v90_v15 = vld [vmem:[#allocation7 + $0x40] sm:$0xff] }
  0x13   :  { %78 = vst [vmem:[#allocation8 + $0x88] sm:$0xff] %v66_v3  ;;  %v91_v16 = vld [vmem:[#allocation7 + $0x48] sm:$0xff]  ;;  %v92_v17 = vld [vmem:[#allocation7 + $0x50] sm:$0xff]  ;;  %v93_v18 = vld [vmem:[#allocation7 + $0x58] sm:$0xff] }
  0x14   :  { %75 = vst [vmem:[#allocation8 + $0x10] sm:$0xff] %v67_v4  ;;  %v94_v19 = vld [vmem:[#allocation7 + $0x60] sm:$0xff]  ;;  %v95_v20 = vld [vmem:[#allocation7 + $0x68] sm:$0xff]  ;;  %v96_v21 = vld [vmem:[#allocation7 + $0x70] sm:$0xff] }
  0x15   :  { %79 = vst [vmem:[#allocation8 + $0x90] sm:$0xff] %v67_v4  ;;  %v97_v22 = vld [vmem:[#allocation7 + $0x78] sm:$0xff]  ;;  %v98_v23 = vld [vmem:[#allocation7 + $0x80] sm:$0xff]  ;;  %v99_v24 = vld [vmem:[#allocation7 + $0x88] sm:$0xff] }
  0x16   :  { %76 = vst [vmem:[#allocation8 + $0x18] sm:$0xff] %v68_v5  ;;  %v100_v25 = vld [vmem:[#allocation7 + $0x90] sm:$0xff]  ;;  %v101_v26 = vld [vmem:[#allocation7 + $0x98] sm:$0xff]  ;;  %v102_v27 = vld [vmem:[#allocation7 + $0xa0] sm:$0xff] }
  0x17   :  { %80 = vst [vmem:[#allocation8 + $0x98] sm:$0xff] %v68_v5  ;;  %v103_v28 = vld [vmem:[#allocation7 + $0xa8] sm:$0xff] }
  0x18   :  { %77 = vst [vmem:[#allocation8 + $0x20] sm:$0xff] %v69_v6 }
  0x19   :  { %81 = vst [vmem:[#allocation8 + $0xa0] sm:$0xff] %v69_v6 }
  0x1a   :  { %105 = vst [vmem:[#allocation8 + $0x30] sm:$0xff] %v83_v8 }
  0x1b   :  { %106 = vst [vmem:[#allocation8 + $0x38] sm:$0xff] %v84_v9 }
  0x1c   :  { %107 = vst [vmem:[#allocation8 + $0x40] sm:$0xff] %v85_v10 }
  0x1d   :  { %108 = vst [vmem:[#allocation8 + $0x48] sm:$0xff] %v86_v11 }
  0x1e   :  { %109 = vst [vmem:[#allocation8 + $0x50] sm:$0xff] %v87_v12 }
  0x1f   :  { %110 = vst [vmem:[#allocation8 + $0x58] sm:$0xff] %v88_v13 }
  0x20   :  { %111 = vst [vmem:[#allocation8 + $0x60] sm:$0xff] %v89_v14 }
  0x21   :  { %112 = vst [vmem:[#allocation8 + $0x68] sm:$0xff] %v90_v15 }
  0x22   :  { %113 = vst [vmem:[#allocation8 + $0x70] sm:$0xff] %v91_v16 }
  0x23   :  { %114 = vst [vmem:[#allocation8 + $0x78] sm:$0xff] %v92_v17 }
  0x24   :  { %115 = vst [vmem:[#allocation8 + $0xa8] sm:$0xff] %v93_v18 }
  0x25   :  { %116 = vst [vmem:[#allocation8 + $0xb0] sm:$0xff] %v94_v19 }
  0x26   :  { %117 = vst [vmem:[#allocation8 + $0xb8] sm:$0xff] %v95_v20 }
  0x27   :  { %118 = vst [vmem:[#allocation8 + $0xc0] sm:$0xff] %v96_v21 }
  0x28   :  { %119 = vst [vmem:[#allocation8 + $0xc8] sm:$0xff] %v97_v22 }
  0x29   :  { %120 = vst [vmem:[#allocation8 + $0xd0] sm:$0xff] %v98_v23 }
  0x2a   :  { %121 = vst [vmem:[#allocation8 + $0xd8] sm:$0xff] %v99_v24 }
  0x2b   :  { %122 = vst [vmem:[#allocation8 + $0xe0] sm:$0xff] %v100_v25 }
  0x2c   :  { %123 = vst [vmem:[#allocation8 + $0xe8] sm:$0xff] %v101_v26 }
  0x2d   :  { %124 = vst [vmem:[#allocation8 + $0xf0] sm:$0xff] %v102_v27 }
  0x2e   :  { %125 = vst [vmem:[#allocation8 + $0xf8] sm:$0xff] %v103_v28 }
  0x2f   :  { %138 = dma.vmem_to_hbm [thread:$0]  %s131_s5, 4096, %s133_s30, [#allocation4], %s265_s6, %s265_s6, %s259_s22  }
  0x30   :  { %255 = dma.done.wait [#allocation4], 4096  }
  0x31   :  { %256 = vsyncadd [#allocation4], 4294963200 }
  0x32   :  { %143 = vsyncpa [#allocation3], 1 }
  0x33   :  { %144 = vsyncpa [#allocation6], 1 }
  0x34   :  { %145 = vsyncpa [#allocation4], 1 }

</bundles_post_ra>
